<compile_context>
chip_gen: v5e
topology: v5e:2x2
jax: 0.10.0
libtpu: 0.0.40
codegen_flags: <defaults>
</compile_context>

<pallas_src>
import functools

import jax
import jax.numpy as jnp
from jax.experimental import pallas as pl
from jax.experimental.pallas import tpu as pltpu

_NUM_CLASSES = 2
_LANE = 128        # lane width: out_proj output is zero-padded to this
_ROW_ALIGN = 16    # row-tile alignment (covers f32 sublane=8 and bf16 packing=16)


def _head_kernel(x_ref, w1_ref, b1_ref, w2_ref, b2_ref, o_ref):
    # x_ref : (TM, 2H)  f32 (cast to the MXU dtype here, on the VPU, so the
    #                        wrapper never makes an extra HBM pass over x)
    # w1_ref: (2H, H)   compute dtype (resident via constant index_map)
    # b1_ref: (1, H)    f32
    # w2_ref: (H, 128)  compute dtype (lane-padded out_proj weight, resident)
    # b2_ref: (1, 128)  f32 (lane-padded out_proj bias)
    # o_ref : (TM, 128) bf16 (lane-dense stores; wrapper slices [:, :2])
    x = x_ref[...].astype(w1_ref.dtype)
    h = jnp.dot(x, w1_ref[...], preferred_element_type=jnp.float32)
    h = jnp.tanh(h + b1_ref[...])                       # f32 bias add + EUP tanh
    out = jnp.dot(h.astype(w2_ref.dtype), w2_ref[...],
                  preferred_element_type=jnp.float32)
    o_ref[...] = (out + b2_ref[...]).astype(o_ref.dtype)


def prepare_head_params(w1, b1, w2, b2, compute_dtype=jnp.bfloat16):
    """One-time weight formatting, hoisted out of the per-call path.

    dense weight (2H, H) -> compute dtype; dense bias -> (1, H) f32;
    out_proj weight (H, 2) -> zero-padded (H, 128) compute dtype;
    out_proj bias -> zero-padded (1, 128) f32.
    Pass compute_dtype=jnp.float32 for a full-f32 parity mode.
    """
    hidden = w1.shape[1]
    w1c = w1.astype(compute_dtype)
    b1f = jnp.asarray(b1, jnp.float32).reshape(1, hidden)
    w2p = jnp.zeros((hidden, _LANE), compute_dtype)
    w2p = w2p.at[:, :_NUM_CLASSES].set(w2.astype(compute_dtype))
    b2p = jnp.zeros((1, _LANE), jnp.float32)
    b2p = b2p.at[:, :_NUM_CLASSES].set(jnp.asarray(b2, jnp.float32).reshape(1, -1))
    return w1c, b1f, w2p, b2p


def _row_tiling(n, tm):
    """Pick (tm_eff, n_blocks, n_pad) for the row (batch) axis."""
    if n <= tm:
        # Whole batch fits in one tile. If it splits cleanly, use two tiles so the
        # "parallel" axis can feed both v7x TensorCores; otherwise a single
        # full-dim block (no padding; (8,128) rule satisfied by the full-dim case).
        if n % (2 * _ROW_ALIGN) == 0:
            return n // 2, 2, n
        return n, 1, n
    n_blocks = pl.cdiv(n, tm)
    return tm, n_blocks, n_blocks * tm


def _vmem_estimate(tm, in_features, hidden, cbytes):
    return int(
        2 * tm * in_features * 4             # f32 x tile, double-buffered
        + 2 * in_features * hidden * cbytes  # w1 (resident)
        + 2 * hidden * 4                     # b1
        + 2 * hidden * _LANE * cbytes        # w2 (lane-padded, resident)
        + 2 * _LANE * 4                      # b2
        + 2 * tm * _LANE * 2                 # bf16 output tile, double-buffered
        + tm * in_features * cbytes          # in-kernel compute-dtype copy of x
        + tm * hidden * 4                    # f32 dense/tanh intermediate
        + (2 << 20))                         # scratch margin


def _vmem_budget_bytes():
    """Physical VMEM of the local chip minus scheduling headroom.

    v7x only has 64 MiB per TensorCore (vs 128 MiB on v5e/v6e), so never assume
    more than the hardware reports; fall back to a conservative 64 MiB.
    """
    cap = 64 << 20
    try:
        info = pltpu.get_tpu_info()
        cap = int(getattr(info, "vmem_capacity_bytes", cap) or cap)
    except Exception:
        pass
    return max(cap - (16 << 20), 24 << 20)


@functools.partial(jax.jit, static_argnames=("tm",))
def roberta_classification_head(x, w1c, b1f, w2p, b2p, *, tm=1024):
    """Matches the torch forward:
         x = x.reshape(-1, hidden*2); x = tanh(dense(x)); x = out_proj(x)
       Weights must be pre-formatted with prepare_head_params()."""
    in_features, hidden = w1c.shape
    x2 = x.reshape(-1, in_features)          # stays f32: kernel casts per tile
    n = x2.shape[0]
    cbytes = jnp.dtype(w1c.dtype).itemsize
    budget = _vmem_budget_bytes()

    # Row tile: as large as possible (better HBM-roofline utilisation, fewer
    # ~0.35us grid steps) but shrunk if the VMEM estimate exceeds the chip budget.
    tm_req = max(_ROW_ALIGN, (int(tm) // _ROW_ALIGN) * _ROW_ALIGN)
    while True:
        tm_eff, n_blocks, n_pad = _row_tiling(n, tm_req)
        vmem_bytes = _vmem_estimate(tm_eff, in_features, hidden, cbytes)
        if vmem_bytes <= budget or tm_req <= 256:
            break
        tm_req //= 2

    # Ragged large batches only: pad rows (rare fallback; small batches use a
    # single full-dim block and aligned batches tile exactly, so no extra pass).
    if n_pad != n:
        x2 = jnp.pad(x2, ((0, n_pad - n), (0, 0)))

    flops = 2 * n_pad * in_features * hidden + 2 * n_pad * hidden * _LANE
    bytes_accessed = (n_pad * in_features * 4 + in_features * hidden * cbytes
                      + hidden * 4 + hidden * _LANE * cbytes + _LANE * 4
                      + n_pad * _LANE * 2)

    out = pl.pallas_call(
        _head_kernel,
        out_shape=jax.ShapeDtypeStruct((n_pad, _LANE), jnp.bfloat16),
        grid=(n_blocks,),
        in_specs=[
            pl.BlockSpec((tm_eff, in_features), lambda i: (i, 0)),   # x tile
            pl.BlockSpec((in_features, hidden), lambda i: (0, 0)),   # w1 resident
            pl.BlockSpec((1, hidden), lambda i: (0, 0)),             # b1 resident
            pl.BlockSpec((hidden, _LANE), lambda i: (0, 0)),         # w2 resident
            pl.BlockSpec((1, _LANE), lambda i: (0, 0)),              # b2 resident
        ],
        out_specs=pl.BlockSpec((tm_eff, _LANE), lambda i: (i, 0)),
        compiler_params=pltpu.CompilerParams(
            dimension_semantics=("parallel",),
            vmem_limit_bytes=int(min(max(vmem_bytes, 4 << 20), budget))),
        cost_estimate=pl.CostEstimate(
            flops=int(flops),
            transcendentals=int(n_pad * hidden),
            bytes_accessed=int(bytes_accessed)),
    )(x2, w1c, b1f, w2p, b2p)

    # Drop the lane padding of out_proj; upcast only the tiny logit slice.
    return out[:n, :_NUM_CLASSES].astype(x.dtype)


def init_params(key, hidden):
    """Deterministic synthetic init matching nn.Linear shapes.
       dense:    weight (hidden, 2*hidden), bias (hidden,)
       out_proj: weight (2, hidden),        bias (2,)
       Stored transposed as (in, out) for the kernel."""
    k1, k2, k3, k4 = jax.random.split(key, 4)
    scale1 = 1.0 / jnp.sqrt(2.0 * hidden)
    scale2 = 1.0 / jnp.sqrt(float(hidden))
    w1 = jax.random.uniform(k1, (2 * hidden, hidden), jnp.float32, -scale1, scale1)
    b1 = jax.random.uniform(k2, (1, hidden), jnp.float32, -scale1, scale1)
    w2 = jax.random.uniform(k3, (hidden, 2), jnp.float32, -scale2, scale2)
    b2 = jax.random.uniform(k4, (1, 2), jnp.float32, -scale2, scale2)
    return w1, b1, w2, b2


if __name__ == "__main__":
    hidden = 32
    batch = 4
    key = jax.random.PRNGKey(0)
    kx, kp = jax.random.split(key)

    # input: (batch, 2, hidden) -> reshaped to (batch, 2*hidden) inside wrapper
    x = jax.random.normal(kx, (batch, 2, hidden), jnp.float32)
    w1, b1, w2, b2 = init_params(kp, hidden)

    # one-time weight formatting (hoisted out of the per-call path)
    params = prepare_head_params(w1, b1, w2, b2)

    out = roberta_classification_head(x, *params)
    out = jax.block_until_ready(out)

    # pure-JAX f32 reference (kernel runs bf16 MXU matmuls with f32 accumulation
    # and a bf16 output store, so compare with a bf16-appropriate tolerance)
    x2 = x.reshape(-1, 2 * hidden)
    ref = jnp.tanh(x2 @ w1 + b1) @ w2 + b2
    assert out.shape == (batch, _NUM_CLASSES)
    assert jnp.allclose(out, ref, atol=5e-2, rtol=5e-2), (
        f"max abs err {jnp.max(jnp.abs(out - ref))}")

    print("KERNEL_OK")
</pallas_src>

<mosaic_0001>
module attributes {stable_mosaic.version = 11 : i64} {
  func.func @_head_kernel(%arg0: i32, %arg1: memref<4x64xf32, #tpu.memory_space<vmem>>, %arg2: memref<64x32xbf16, #tpu.memory_space<vmem>>, %arg3: memref<1x32xf32, #tpu.memory_space<vmem>>, %arg4: memref<32x128xbf16, #tpu.memory_space<vmem>>, %arg5: memref<1x128xf32, #tpu.memory_space<vmem>>, %arg6: memref<4x128xbf16, #tpu.memory_space<vmem>>) attributes {dimension_semantics = [#tpu.dimension_semantics<parallel>], iteration_bounds = array<i64: 1>, scalar_prefetch = 0 : i64, scratch_operands = 0 : i64, tpu.core_type = #tpu.core_type<tc>, window_params = [{transform_indices = @transform_0, window_bounds = array<i64: 4, 64>}, {pipeline_mode = #tpu.pipeline_mode<synchronous>, transform_indices = @transform_1, window_bounds = array<i64: 64, 32>}, {pipeline_mode = #tpu.pipeline_mode<synchronous>, transform_indices = @transform_2, window_bounds = array<i64: 1, 32>}, {pipeline_mode = #tpu.pipeline_mode<synchronous>, transform_indices = @transform_3, window_bounds = array<i64: 32, 128>}, {pipeline_mode = #tpu.pipeline_mode<synchronous>, transform_indices = @transform_4, window_bounds = array<i64: 1, 128>}, {transform_indices = @transform_5, window_bounds = array<i64: 4, 128>}]} {
    %c0 = arith.constant 0 : index
    %c0_0 = arith.constant 0 : index
    %0 = vector.load %arg1[%c0, %c0_0] : memref<4x64xf32, #tpu.memory_space<vmem>>, vector<4x64xf32>
    %1 = arith.truncf %0 : vector<4x64xf32> to vector<4x64xbf16>
    %c0_1 = arith.constant 0 : index
    %c0_2 = arith.constant 0 : index
    %2 = vector.load %arg2[%c0_1, %c0_2] : memref<64x32xbf16, #tpu.memory_space<vmem>>, vector<64x32xbf16>
    %cst = arith.constant dense<0.000000e+00> : vector<4x32xf32>
    %3 = tpu.matmul %1, %2, %cst {dimension_numbers = #tpu.dot_dimension_numbers<[1], [0], [0], [1], [0, 0, 1, 1], [], []>} : vector<4x64xbf16>, vector<64x32xbf16>, vector<4x32xf32> -> vector<4x32xf32>
    %c0_3 = arith.constant 0 : index
    %c0_4 = arith.constant 0 : index
    %4 = vector.load %arg3[%c0_3, %c0_4] : memref<1x32xf32, #tpu.memory_space<vmem>>, vector<1x32xf32>
    %5 = vector.broadcast %4 : vector<1x32xf32> to vector<4x32xf32>
    %6 = arith.addf %3, %5 : vector<4x32xf32>
    %7 = math.tanh %6 : vector<4x32xf32>
    %8 = arith.truncf %7 : vector<4x32xf32> to vector<4x32xbf16>
    %c0_5 = arith.constant 0 : index
    %c0_6 = arith.constant 0 : index
    %9 = vector.load %arg4[%c0_5, %c0_6] : memref<32x128xbf16, #tpu.memory_space<vmem>>, vector<32x128xbf16>
    %cst_7 = arith.constant dense<0.000000e+00> : vector<4x128xf32>
    %10 = tpu.matmul %8, %9, %cst_7 {dimension_numbers = #tpu.dot_dimension_numbers<[1], [0], [0], [1], [0, 0, 1, 1], [], []>} : vector<4x32xbf16>, vector<32x128xbf16>, vector<4x128xf32> -> vector<4x128xf32>
    %c0_8 = arith.constant 0 : index
    %c0_9 = arith.constant 0 : index
    %11 = vector.load %arg5[%c0_8, %c0_9] : memref<1x128xf32, #tpu.memory_space<vmem>>, vector<1x128xf32>
    %12 = vector.broadcast %11 : vector<1x128xf32> to vector<4x128xf32>
    %13 = arith.addf %10, %12 : vector<4x128xf32>
    %14 = arith.truncf %13 : vector<4x128xf32> to vector<4x128xbf16>
    %c0_10 = arith.constant 0 : index
    %c0_11 = arith.constant 0 : index
    %15 = vector.load %arg6[%c0_10, %c0_11] : memref<4x128xbf16, #tpu.memory_space<vmem>>, vector<4x128xbf16>
    tpu.vector_store %arg6[%c0_10, %c0_11], %14 {strides = array<i32>} : memref<4x128xbf16, #tpu.memory_space<vmem>>, vector<4x128xbf16>,
    return
  }
  func.func @transform_0(%arg0: i32) -> (i32, i32) {
    %c0_i32 = arith.constant 0 : i32
    %c0_i32_0 = arith.constant 0 : i32
    return %arg0, %c0_i32 : i32, i32
  }
  func.func @transform_1(%arg0: i32) -> (i32, i32) {
    %c0_i32 = arith.constant 0 : i32
    %c0_i32_0 = arith.constant 0 : i32
    %c0_i32_1 = arith.constant 0 : i32
    return %c0_i32, %c0_i32_0 : i32, i32
  }
  func.func @transform_2(%arg0: i32) -> (i32, i32) {
    %c0_i32 = arith.constant 0 : i32
    %c0_i32_0 = arith.constant 0 : i32
    %c0_i32_1 = arith.constant 0 : i32
    return %c0_i32, %c0_i32_0 : i32, i32
  }
  func.func @transform_3(%arg0: i32) -> (i32, i32) {
    %c0_i32 = arith.constant 0 : i32
    %c0_i32_0 = arith.constant 0 : i32
    %c0_i32_1 = arith.constant 0 : i32
    return %c0_i32, %c0_i32_0 : i32, i32
  }
  func.func @transform_4(%arg0: i32) -> (i32, i32) {
    %c0_i32 = arith.constant 0 : i32
    %c0_i32_0 = arith.constant 0 : i32
    %c0_i32_1 = arith.constant 0 : i32
    return %c0_i32, %c0_i32_0 : i32, i32
  }
  func.func @transform_5(%arg0: i32) -> (i32, i32) {
    %c0_i32 = arith.constant 0 : i32
    %c0_i32_0 = arith.constant 0 : i32
    return %arg0, %c0_i32 : i32, i32
  }
}

</mosaic_0001>

<bundles_post_ra>
// kernel: roberta_classification_head.1
= control target key start
LH: loop header
LB: loop body
LE: loop exit
PB: predicated region body
PF: predicated region fallthrough
CT: control target
= control target key end

     0   :  { %vm59_vm0 = vcmask 523264   ;;  %vm98_vm1 = vcmask 261120   ;;  %s217_s1 = inlined_call_operand.vmem [shape: bf16[64,32], index: 1, kind: input, shape index: {}]   ;;  %s218_s2 = inlined_call_operand.vmem [shape: f32[1,32], index: 2, kind: input, shape index: {}]   ;;  %s219_s0 = inlined_call_operand.vmem [shape: f32[4,64], index: 0, kind: input, shape index: {}]   ;;  %s220_s4 = inlined_call_operand.vmem [shape: f32[1,128], index: 4, kind: input, shape index: {}]   ;;  %s221_s3 = inlined_call_operand.vmem [shape: bf16[32,128], index: 3, kind: input, shape index: {}]   ;;  %s222_s5 = inlined_call_operand.vmem [shape: bf16[4,128], index: 5, kind: output, shape index: {}]  }
   0x1   :  { %v150_v0 = vld [vmem:[%s217_s1 + $0x18] sm:$0xff]  ;;  %v149_v1 = vld [vmem:[%s217_s1 + $0x10] sm:$0xff]  ;;  %v148_v2 = vld [vmem:[%s217_s1 + $0x8] sm:$0xff] }
   0x2   :  { %67 = vmatpush.bf16.msra.mxu0 %v150_v0  ;;  %v147_v3 = vld [vmem:[%s217_s1] sm:$0xff]  ;;  %v152_v6 = vld [vmem:[%s221_s3 + $0x8] sm:$0xff] }
   0x3   :  { %v21_v4 = vld [vmem:[%s219_s0] sm:$0xf]  ;;  %108 = vmatpush.bf16.msra.mxu1 %v152_v6 }
   0x4   :  { %v22_v5 = vpack.c.bf16 %v21_v4, %v21_v4  ;;  %v151_v7 = vld [vmem:[%s221_s3] sm:$0xff] }
   0x5   :  { %v153_v8 = vld [vmem:[%s218_s2] ss:$0 sm:$0xff] }
   0x6   :  { %68 = vmatpush.bf16.msra.mxu0 %v149_v1  ;;  %v154_v14 = vld [vmem:[%s220_s4] ss:$0 sm:$0xff] }
   0x7   :  { %109 = vmatpush.bf16.msra.mxu1 %v151_v7 }
   0xa   :  { %69 = vmatpush.bf16.msra.mxu0 %v148_v2 }
   0xe   :  { %70 = vmatpush.bf16.msra.mxu0 %v147_v3 }
  0x11   :  { %137 = vmatmul.msk.bf16.vlgmr.msra.gmra.mxu0 %vm59_vm0, %v22_v5 }
  0x8e   :  { %v72_v9 = vpop.f32.mrf.mxu0 }
  0x8f   :  { %v73_v10 = vadd.f32 %v153_v8, %v72_v9 }
  0x91   :  { %155 = vtanh.f32 %v73_v10 }
  0x96   :  { %v74_v11 = vpop.f32.mrf.mxu0 }
  0x97   :  { %v156_v12 = vpop.eup %155 }
  0x98   :  { %v77_v13 = vpack.c.bf16 %v156_v12, %v156_v12 }
  0x9a   :  { %146 = vmatmul.msk.bf16.vlgmr.msra.gmra.mxu1 %vm98_vm1, %v77_v13 }
 0x117   :  { %v111_v15 = vpop.f32.mrf.mxu1 }
 0x118   :  { %v112_v16 = vadd.f32 %v154_v14, %v111_v15 }
 0x11a   :  { %v115_v17 = vpack.c.bf16 %v112_v16, %v112_v16 }
 0x11c   :  { %116 = vst [vmem:[%s222_s5] sm:$0x3] %v115_v17 }
 0x11f   :  { %v113_v18 = vpop.f32.mrf.mxu1 }

</bundles_post_ra>
